<compile_context>
chip_gen: v7x
topology: tpu7x:2x2x1
jax: 0.10.0
libtpu: 0.0.40
codegen_flags: <defaults>
</compile_context>

<pallas_src>
import jax
import jax.numpy as jnp
from jax import lax
from jax.experimental import pallas as pl
from jax.experimental.pallas import tpu as pltpu

BN_EPS = 1e-5
LANE = 128


def _round_up(n, m):
    return ((n + m - 1) // m) * m


def classifier_kernel(x_ref, w1_ref, w2_ref, p_ref, o_ref):
    # ---- fc1 ----  bf16 MXU operands, f32 accumulation.  (b1 dropped: cancels
    # under training-mode BN.)
    h = jnp.dot(x_ref[...], w1_ref[...],
                preferred_element_type=jnp.float32)            # (B, Cp) f32

    # ---- BatchNorm1d, training-mode batch stats, single reduction pass ----
    inv_b = 1.0 / x_ref.shape[0]                               # static scalar
    s1 = jnp.sum(h, axis=0, keepdims=True)                     # (1, Cp)
    s2 = jnp.sum(h * h, axis=0, keepdims=True)                 # (1, Cp)
    mean = s1 * inv_b
    var = s2 * inv_b - mean * mean                             # biased variance

    gamma = p_ref[0:1, :]                                      # (1, Cp)
    beta = p_ref[1:2, :]
    b2 = p_ref[2:3, :]

    inv = gamma * lax.rsqrt(var + BN_EPS)                      # gamma folded in (EUP)
    h_bn = (h - mean) * inv + beta

    # ---- ReLU + fc2 ----  bf16 MXU operands, lane-dense (B, Cp) f32 store.
    h_relu = jnp.maximum(h_bn, 0.0).astype(jnp.bfloat16)
    o_ref[...] = jnp.dot(h_relu, w2_ref[...],
                         preferred_element_type=jnp.float32) + b2


def pack_classifier_params(w1, gamma, beta, w2, b2):
    """One-time parameter prep.

    w1: (input_num, C) = fc1.weight.T ; w2: (C, C) = fc2.weight.T
    Pads both the input-feature (K) and class (C) axes to lane multiples, stores the
    matmul weights in bf16, and packs gamma/beta/b2 into a single (3, Cp) f32 operand.
    Padded gamma/beta/b2 entries MUST stay zero so padded output columns are exactly
    zero (0 * rsqrt(eps) * 0 + 0).  fc1 bias is intentionally NOT packed (no-op under
    training-mode BN).
    """
    in_num, c = w1.shape
    kp = _round_up(in_num, LANE)
    cp = _round_up(c, LANE)

    w1p = jnp.zeros((kp, cp), jnp.bfloat16).at[:in_num, :c].set(
        w1.astype(jnp.bfloat16))
    w2p = jnp.zeros((cp, cp), jnp.bfloat16).at[:c, :c].set(
        w2.astype(jnp.bfloat16))

    params = jnp.zeros((3, cp), jnp.float32)
    params = params.at[0, :c].set(gamma)
    params = params.at[1, :c].set(beta)
    params = params.at[2, :c].set(b2)
    return w1p, w2p, params


def classifier_forward(x, w1p, w2p, params):
    """x: (B, input_num) f32.

    Returns the lane-dense padded logits (B, Cp) f32; columns num_classes..Cp-1 are
    exactly zero.  The slice back to num_classes is deliberately left to the consumer
    (or done lazily) so the unmasked-store / lane-dense layout is preserved.
    """
    b, in_num = x.shape
    kp, cp = w1p.shape

    # Lane-dense K: zero-pad the feature axis to a 128 multiple and cast the MXU LHS
    # to bf16 (single fused XLA op; a production producer should emit padded bf16
    # features directly).
    xp = jnp.zeros((b, kp), jnp.bfloat16).at[:, :in_num].set(
        x.astype(jnp.bfloat16))

    vmem = pl.BlockSpec(memory_space=pltpu.MemorySpace.VMEM)
    return pl.pallas_call(
        classifier_kernel,
        out_shape=jax.ShapeDtypeStruct((b, cp), jnp.float32),
        in_specs=[vmem] * 4,
        out_specs=vmem,
    )(xp, w1p, w2p, params)


if __name__ == "__main__":
    # Small shapes consistent with the module: input_num=32, num_classes=16, batch=8.
    B, INPUT_NUM, NUM_CLASSES = 8, 32, 16

    key = jax.random.PRNGKey(0)
    kx, kw1, kb1, kw2, kb2 = jax.random.split(key, 5)

    x = jax.random.normal(kx, (B, INPUT_NUM), dtype=jnp.float32)

    # Deterministic parameter init (uniform, roughly torch.nn.Linear scale).
    bound1 = 1.0 / (INPUT_NUM ** 0.5)
    w1 = jax.random.uniform(kw1, (INPUT_NUM, NUM_CLASSES), jnp.float32,
                            -bound1, bound1)                     # fc1.weight.T
    b1 = jax.random.uniform(kb1, (NUM_CLASSES,), jnp.float32, -bound1, bound1)

    bound2 = 1.0 / (NUM_CLASSES ** 0.5)
    w2 = jax.random.uniform(kw2, (NUM_CLASSES, NUM_CLASSES), jnp.float32,
                            -bound2, bound2)                     # fc2.weight.T
    b2 = jax.random.uniform(kb2, (NUM_CLASSES,), jnp.float32, -bound2, bound2)

    gamma = jnp.ones((NUM_CLASSES,), jnp.float32)                # bn1.weight
    beta = jnp.zeros((NUM_CLASSES,), jnp.float32)                # bn1.bias

    # One-time packing / padding (outside the kernel, like weight prep).
    w1p, w2p, params = pack_classifier_params(w1, gamma, beta, w2, b2)

    out_padded = classifier_forward(x, w1p, w2p, params)
    jax.block_until_ready(out_padded)

    # Pure-JAX f32 reference with FULL PyTorch semantics (including b1, which must
    # cancel under training-mode BN).  Tolerances widened vs. the f32-only kernel
    # because the MXU operands are now bf16.
    h = x @ w1 + b1
    mean = jnp.mean(h, axis=0, keepdims=True)
    var = jnp.mean((h - mean) ** 2, axis=0, keepdims=True)
    ref = jnp.maximum(gamma * (h - mean) / jnp.sqrt(var + BN_EPS) + beta, 0.0) @ w2 + b2

    out = out_padded[:, :NUM_CLASSES]   # consumer-side slice, only for the check
    assert out_padded.shape == (B, _round_up(NUM_CLASSES, LANE))
    assert out.shape == (B, NUM_CLASSES)
    # Padded columns must be exactly zero (gamma/beta/b2 zero-padding invariant).
    assert jnp.all(out_padded[:, NUM_CLASSES:] == 0.0)
    assert jnp.allclose(out, ref, atol=5e-2, rtol=5e-2)

    print("KERNEL_OK")
</pallas_src>

<mosaic_0001>
module attributes {stable_mosaic.version = 11 : i64} {
  func.func @classifier_kernel(%arg0: memref<8x128xbf16, #tpu.memory_space<vmem>>, %arg1: memref<128x128xbf16, #tpu.memory_space<vmem>>, %arg2: memref<128x128xbf16, #tpu.memory_space<vmem>>, %arg3: memref<3x128xf32, #tpu.memory_space<vmem>>, %arg4: memref<8x128xf32, #tpu.memory_space<vmem>>) attributes {dimension_semantics = [], scalar_prefetch = 0 : i64, scratch_operands = 0 : i64, tpu.core_type = #tpu.core_type<tc>} {
    %c0 = arith.constant 0 : index
    %c0_0 = arith.constant 0 : index
    %0 = vector.load %arg0[%c0, %c0_0] : memref<8x128xbf16, #tpu.memory_space<vmem>>, vector<8x128xbf16>
    %c0_1 = arith.constant 0 : index
    %c0_2 = arith.constant 0 : index
    %1 = vector.load %arg1[%c0_1, %c0_2] : memref<128x128xbf16, #tpu.memory_space<vmem>>, vector<128x128xbf16>
    %cst = arith.constant dense<0.000000e+00> : vector<8x128xf32>
    %2 = tpu.matmul %0, %1, %cst {dimension_numbers = #tpu.dot_dimension_numbers<[1], [0], [0], [1], [0, 0, 1, 1], [], []>} : vector<8x128xbf16>, vector<128x128xbf16>, vector<8x128xf32> -> vector<8x128xf32>
    %cst_3 = arith.constant dense<0.000000e+00> : vector<128xf32>
    %3 = vector.multi_reduction <add>, %2, %cst_3 [0] : vector<8x128xf32> to vector<128xf32>
    %4 = vector.shape_cast %3 : vector<128xf32> to vector<1x128xf32>
    %5 = arith.mulf %2, %2 : vector<8x128xf32>
    %cst_4 = arith.constant dense<0.000000e+00> : vector<128xf32>
    %6 = vector.multi_reduction <add>, %5, %cst_4 [0] : vector<8x128xf32> to vector<128xf32>
    %7 = vector.shape_cast %6 : vector<128xf32> to vector<1x128xf32>
    %cst_5 = arith.constant 1.250000e-01 : f32
    %8 = vector.broadcast %cst_5 : f32 to vector<1x128xf32>
    %9 = arith.mulf %4, %8 : vector<1x128xf32>
    %cst_6 = arith.constant 1.250000e-01 : f32
    %10 = vector.broadcast %cst_6 : f32 to vector<1x128xf32>
    %11 = arith.mulf %7, %10 : vector<1x128xf32>
    %12 = arith.mulf %9, %9 : vector<1x128xf32>
    %13 = arith.subf %11, %12 : vector<1x128xf32>
    %c0_7 = arith.constant 0 : index
    %c0_8 = arith.constant 0 : index
    %14 = vector.load %arg3[%c0_7, %c0_8] : memref<3x128xf32, #tpu.memory_space<vmem>>, vector<1x128xf32>
    %c1 = arith.constant 1 : index
    %c0_9 = arith.constant 0 : index
    %15 = vector.load %arg3[%c1, %c0_9] : memref<3x128xf32, #tpu.memory_space<vmem>>, vector<1x128xf32>
    %c2 = arith.constant 2 : index
    %c0_10 = arith.constant 0 : index
    %16 = vector.load %arg3[%c2, %c0_10] : memref<3x128xf32, #tpu.memory_space<vmem>>, vector<1x128xf32>
    %cst_11 = arith.constant 9.99999974E-6 : f32
    %17 = vector.broadcast %cst_11 : f32 to vector<1x128xf32>
    %18 = arith.addf %13, %17 : vector<1x128xf32>
    %19 = math.rsqrt %18 : vector<1x128xf32>
    %20 = arith.mulf %14, %19 : vector<1x128xf32>
    %21 = vector.broadcast %9 : vector<1x128xf32> to vector<8x128xf32>
    %22 = arith.subf %2, %21 : vector<8x128xf32>
    %23 = vector.broadcast %20 : vector<1x128xf32> to vector<8x128xf32>
    %24 = arith.mulf %22, %23 : vector<8x128xf32>
    %25 = vector.broadcast %15 : vector<1x128xf32> to vector<8x128xf32>
    %26 = arith.addf %24, %25 : vector<8x128xf32>
    %cst_12 = arith.constant 0.000000e+00 : f32
    %27 = vector.broadcast %cst_12 : f32 to vector<8x128xf32>
    %28 = arith.maximumf %26, %27 : vector<8x128xf32>
    %29 = arith.truncf %28 : vector<8x128xf32> to vector<8x128xbf16>
    %c0_13 = arith.constant 0 : index
    %c0_14 = arith.constant 0 : index
    %30 = vector.load %arg2[%c0_13, %c0_14] : memref<128x128xbf16, #tpu.memory_space<vmem>>, vector<128x128xbf16>
    %cst_15 = arith.constant dense<0.000000e+00> : vector<8x128xf32>
    %31 = tpu.matmul %29, %30, %cst_15 {dimension_numbers = #tpu.dot_dimension_numbers<[1], [0], [0], [1], [0, 0, 1, 1], [], []>} : vector<8x128xbf16>, vector<128x128xbf16>, vector<8x128xf32> -> vector<8x128xf32>
    %32 = vector.broadcast %16 : vector<1x128xf32> to vector<8x128xf32>
    %33 = arith.addf %31, %32 : vector<8x128xf32>
    %c0_16 = arith.constant 0 : index
    %c0_17 = arith.constant 0 : index
    %34 = vector.load %arg4[%c0_16, %c0_17] : memref<8x128xf32, #tpu.memory_space<vmem>>, vector<8x128xf32>
    tpu.vector_store %arg4[%c0_16, %c0_17], %33 {strides = array<i32>} : memref<8x128xf32, #tpu.memory_space<vmem>>, vector<8x128xf32>,
    return
  }
}

</mosaic_0001>

<bundles_post_ra>
// kernel: tpu_custom_call.1
= control target key start
LH: loop header
LB: loop body
LE: loop exit
PB: predicated region body
PF: predicated region fallthrough
CT: control target
= control target key end

     0   :  { %9 = vsyncpa [#allocation3], 0  ;;  %s616_s0 = inlined_call_operand.hbm [shape: bf16[8,128], index: 0, kind: input, shape index: {}]   ;;  %s617_s1 = inlined_call_operand.hbm [shape: bf16[128,128], index: 1, kind: input, shape index: {}]   ;;  %s618_s2 = inlined_call_operand.hbm [shape: bf16[128,128], index: 2, kind: input, shape index: {}]   ;;  %s619_s3 = inlined_call_operand.vmem [shape: f32[3,128], index: 3, kind: input, shape index: {}]   ;;  %s620_s4 = inlined_call_operand.hbm [shape: f32[8,128], index: 4, kind: output, shape index: {}]  }
   0x1   :  { %10 = vsyncpa [#allocation6], 0 }
   0x2   :  { %11 = vsyncpa [#allocation4], 0  ;;  %s520_s15 = smov [#allocation5]   ;;  %s426_s19 = scalar_lea.hbm %s617_s1, 1024 }
   0x3   :  { %s27_s16 = sshll.u32 %s520_s15, 4  ;;  %p427_p0 = scmp.ne.s32.totalorder %s617_s1, %s426_s19  ;;  %s28_s16 = int_to_ptr.vmem [resolvable:$true] %s27_s16 }
   0x4   :  { %p430_p1 = scmp.lt.u32.totalorder %s426_s19, %s617_s1 }
   0x6   :  { %p432_p2 = pnand %p430_p1, %p427_p0 }
   0x8   :  { %435 = shalt.err (!%p432_p2)
}
   0x9   :  { %s436_s24 = scalar_lea.vmem %s28_s16, 1024  ;;  %p441_p4 = scmp.lt.s32.totalorder %s28_s16, %s28_s16 }
   0xa   :  { %p437_p3 = scmp.ne.s32.totalorder %s28_s16, %s436_s24  ;;  %p442_p5 = scmp.lt.s32.totalorder %s436_s24, %s436_s24 }
   0xc   :  { %p443_p6 = por %p442_p5, %p441_p4 }
   0xe   :  { %p444_p7 = pnand %p443_p6, %p437_p3 }
  0x10   :  { %447 = shalt.err (!%p444_p7)
}
  0x11   :  { %s521_s25 = smov 64   ;;  %s522_s26 = smov 4  }
  0x12   :  { %33 = dma.hbm_to_vmem [thread:$0]  %s617_s1, 1024, %s28_s16, [#allocation6], %s521_s25, %s521_s25, %s522_s26  }
  0x13   :  { %s523_s29 = smov [#allocation2]   ;;  %s524_s5 = smov [#allocation7]  }
  0x14   :  { %s18_s30 = sshll.u32 %s523_s29, 4  ;;  %s39_s6 = sshll.u32 %s524_s5, 4  ;;  %s19_s30 = int_to_ptr.vmem [resolvable:$true] %s18_s30  ;;  %s40_s6 = int_to_ptr.vmem [resolvable:$true] %s39_s6 }
  0x15   :  { %s448_s9 = scalar_lea.hbm %s616_s0, 64 }
  0x16   :  { %p449_p8 = scmp.ne.s32.totalorder %s616_s0, %s448_s9  ;;  %p452_p9 = scmp.lt.u32.totalorder %s448_s9, %s616_s0 }
  0x18   :  { %p454_p10 = pnand %p452_p9, %p449_p8 }
  0x1a   :  { %457 = shalt.err (!%p454_p10)
}
  0x1b   :  { %s458_s1 = scalar_lea.vmem %s19_s30, 64  ;;  %p463_p12 = scmp.lt.s32.totalorder %s19_s30, %s19_s30 }
  0x1c   :  { %p459_p11 = scmp.ne.s32.totalorder %s19_s30, %s458_s1  ;;  %p464_p13 = scmp.lt.s32.totalorder %s458_s1, %s458_s1 }
  0x1e   :  { %p465_p0 = por %p464_p13, %p463_p12 }
  0x20   :  { %p466_p1 = pnand %p465_p0, %p459_p11 }
  0x22   :  { %469 = shalt.err (!%p466_p1)
}
  0x23   :  { %21 = dma.hbm_to_vmem [thread:$0]  %s616_s0, 64, %s19_s30, [#allocation3]  }
  0x24   :  { %s470_s18 = scalar_lea.hbm %s618_s2, 1024 }
  0x25   :  { %p471_p2 = scmp.ne.s32.totalorder %s618_s2, %s470_s18  ;;  %p474_p3 = scmp.lt.u32.totalorder %s470_s18, %s618_s2 }
  0x27   :  { %p476_p4 = pnand %p474_p3, %p471_p2 }
  0x29   :  { %479 = shalt.err (!%p476_p4)
}
  0x2a   :  { %s480_s23 = scalar_lea.vmem %s40_s6, 1024  ;;  %p485_p6 = scmp.lt.s32.totalorder %s40_s6, %s40_s6 }
  0x2b   :  { %p481_p5 = scmp.ne.s32.totalorder %s40_s6, %s480_s23  ;;  %p486_p7 = scmp.lt.s32.totalorder %s480_s23, %s480_s23 }
  0x2d   :  { %p487_p8 = por %p486_p7, %p485_p6 }
  0x2f   :  { %p488_p9 = pnand %p487_p8, %p481_p5 }
  0x31   :  { %491 = shalt.err (!%p488_p9)
}
  0x32   :  { %45 = dma.hbm_to_vmem [thread:$0]  %s618_s2, 1024, %s40_s6, [#allocation6], %s521_s25, %s521_s25, %s522_s26  }
  0x33   :  { %514 = dma.done.wait [#allocation3], 64  }
  0x34   :  { %515 = vsyncadd [#allocation3], 4294967232 }
  0x35   :  { %516 = dma.done.wait [#allocation6], 2048  }
  0x36   :  { %517 = vsyncadd [#allocation6], 4294965248  ;;  %v525_v0 = vmov 0.0   ;;  %vm526_vm0 = vmmov 0   ;;  %v408_v1 = vld [vmem:[#allocation5] sm:$0xff]   ;;  %v409_v2 = vld [vmem:[#allocation5 + $0x8] sm:$0xff]   ;;  %v187_v40 = vlaneseq }
  0x37   :  { %360 = vmatprep.subr.bf16.mxu0 %v525_v0  ;;  %376 = vmatprep.mubr.msk.bf16.mxu0 %vm526_vm0, %v525_v0  ;;  %v410_v3 = vld [vmem:[#allocation5 + $0x10] sm:$0xff]   ;;  %v411_v4 = vld [vmem:[#allocation5 + $0x18] sm:$0xff]   ;;  %v412_v5 = vld [vmem:[#allocation5 + $0x20] sm:$0xff]   ;;  %s527_s30 = smov [#allocation8]  }
  0x38   :  { %380 = vmatprep.subr.bf16.mxu1 %v525_v0  ;;  %396 = vmatprep.mubr.msk.bf16.mxu1 %vm526_vm0, %v525_v0  ;;  %v413_v6 = vld [vmem:[#allocation5 + $0x28] sm:$0xff]   ;;  %v414_v7 = vld [vmem:[#allocation5 + $0x30] sm:$0xff]   ;;  %v415_v8 = vld [vmem:[#allocation5 + $0x38] sm:$0xff]   ;;  %v188_v41 = vshrl.u32 %v187_v40, 7  ;;  %s314_s5 = sshll.u32 %s527_s30, 4  ;;  %s315_s5 = int_to_ptr.vmem [resolvable:$true] %s314_s5 }
  0x39   :  { %361 = vmatpush3.bf16.msra.mxu0 %v408_v1  ;;  %v58_v9 = vld [vmem:[#allocation2] sm:$0xf]  ;;  %v416_v10 = vld [vmem:[#allocation7] sm:$0xff]   ;;  %v417_v11 = vld [vmem:[#allocation7 + $0x8] sm:$0xff]   ;;  %s492_s6 = scalar_lea.vmem %s315_s5, 128  ;;  %p497_p11 = scmp.lt.s32.totalorder %s315_s5, %s315_s5 }
  0x3a   :  { %362 = vmatprep.subr.bf16.mxu0 %v525_v0  ;;  %381 = vmatpush3.bf16.msra.mxu1 %v416_v10  ;;  %v418_v12 = vld [vmem:[#allocation7 + $0x10] sm:$0xff]   ;;  %v419_v13 = vld [vmem:[#allocation7 + $0x18] sm:$0xff]   ;;  %v420_v14 = vld [vmem:[#allocation7 + $0x20] sm:$0xff]   ;;  %v189_v43 = vsub.s32 0, %v188_v41  ;;  %p493_p10 = scmp.ne.s32.totalorder %s315_s5, %s492_s6  ;;  %p498_p12 = scmp.lt.s32.totalorder %s492_s6, %s492_s6 }
  0x3b   :  { %382 = vmatprep.subr.bf16.mxu1 %v525_v0  ;;  %v421_v15 = vld [vmem:[#allocation7 + $0x28] sm:$0xff]   ;;  %v422_v16 = vld [vmem:[#allocation7 + $0x30] sm:$0xff]   ;;  %v423_v17 = vld [vmem:[#allocation7 + $0x38] sm:$0xff]  }
  0x3c   :  { %v180_v42 = vld [vmem:[%s619_s3] sm:$0x1]  ;;  %v332_v48 = vld [vmem:[%s619_s3 + $0x1] ss:$0 sm:$0xff]  ;;  %v333_v53 = vld [vmem:[%s619_s3 + $0x2] ss:$0 sm:$0xff]  ;;  %p499_p13 = por %p498_p12, %p497_p11 }
  0x3d   :  { %363 = vmatpush3.bf16.msra.mxu0 %v409_v2 }
  0x3e   :  { %364 = vmatprep.subr.bf16.mxu0 %v525_v0  ;;  %383 = vmatpush3.bf16.msra.mxu1 %v417_v11  ;;  %p500_p0 = pnand %p499_p13, %p493_p10 }
  0x3f   :  { %384 = vmatprep.subr.bf16.mxu1 %v525_v0 }
  0x41   :  { %365 = vmatpush3.bf16.msra.mxu0 %v410_v3 }
  0x42   :  { %366 = vmatprep.subr.bf16.mxu0 %v525_v0  ;;  %385 = vmatpush3.bf16.msra.mxu1 %v418_v12 }
  0x43   :  { %386 = vmatprep.subr.bf16.mxu1 %v525_v0 }
  0x45   :  { %367 = vmatpush3.bf16.msra.mxu0 %v411_v4 }
  0x46   :  { %368 = vmatprep.subr.bf16.mxu0 %v525_v0  ;;  %387 = vmatpush3.bf16.msra.mxu1 %v419_v13 }
  0x47   :  { %388 = vmatprep.subr.bf16.mxu1 %v525_v0 }
  0x49   :  { %369 = vmatpush3.bf16.msra.mxu0 %v412_v5 }
  0x4a   :  { %370 = vmatprep.subr.bf16.mxu0 %v525_v0  ;;  %389 = vmatpush3.bf16.msra.mxu1 %v420_v14 }
  0x4b   :  { %390 = vmatprep.subr.bf16.mxu1 %v525_v0 }
  0x4d   :  { %371 = vmatpush3.bf16.msra.mxu0 %v413_v6 }
  0x4e   :  { %372 = vmatprep.subr.bf16.mxu0 %v525_v0  ;;  %391 = vmatpush3.bf16.msra.mxu1 %v421_v15 }
  0x4f   :  { %392 = vmatprep.subr.bf16.mxu1 %v525_v0 }
  0x51   :  { %373 = vmatpush3.bf16.msra.mxu0 %v414_v7 }
  0x52   :  { %374 = vmatprep.subr.bf16.mxu0 %v525_v0  ;;  %393 = vmatpush3.bf16.msra.mxu1 %v422_v16 }
  0x53   :  { %394 = vmatprep.subr.bf16.mxu1 %v525_v0 }
  0x55   :  { %375 = vmatpush3.bf16.msra.mxu0 %v415_v8 }
  0x56   :  { %395 = vmatpush3.bf16.msra.mxu1 %v423_v17 }
  0x58   :  { %377 = vmatmul.mubr.bf16.vlgmr.msra.gmra.mrb[0].mxu0 %v58_v9 }
 0x12b   :  { %v157_v18 = vpop.f32.mrb[0].mxu0 }
 0x12c   :  { %v163_v19 = vrot.slane %v157_v18, 4  ;;  %v169_v20 = vmul.f32 %v157_v18, %v157_v18  ;;  %v378_v21 = vpop.f32.mrb[1].mxu0 }
 0x12d   :  { %v160_v22 = vpop.f32.mrb[2].mxu0 }
 0x12e   :  { %v164_v23 = vadd.f32 %v163_v19, %v157_v18  ;;  %v170_v24 = vrot.slane %v169_v20, 4  ;;  %v379_v25 = vpop.f32.mrb[3].mxu0 }
 0x130   :  { %v165_v26 = vrot.slane %v164_v23, 2  ;;  %v171_v27 = vadd.f32 %v170_v24, %v169_v20 }
 0x132   :  { %v166_v28 = vadd.f32 %v165_v26, %v164_v23  ;;  %v172_v29 = vrot.slane %v171_v27, 2 }
 0x134   :  { %v167_v30 = vrot.slane %v166_v28, 1  ;;  %v173_v31 = vadd.f32 %v172_v29, %v171_v27 }
 0x136   :  { %v168_v32 = vadd.f32 %v167_v30, %v166_v28  ;;  %v174_v33 = vrot.slane %v173_v31, 1 }
 0x138   :  { %v175_v34 = vadd.f32 %v174_v33, %v173_v31  ;;  %v176_v35 = vmul.f32 0.125, %v168_v32 }
 0x13a   :  { %v177_v36 = vmul.f32 0.125, %v175_v34  ;;  %v178_v37 = vmul.f32 %v176_v35, %v176_v35  ;;  %v186_v46 = vsub.f32 %v157_v18, %v176_v35 }
 0x13c   :  { %v179_v38 = vsub.f32 %v177_v36, %v178_v37 }
 0x13e   :  { %v183_v39 = vadd.f32 1e-05, %v179_v38 }
 0x140   :  { %424 = vrsqrt.f32 %v183_v39 }
 0x14a   :  { %v425_v44 = vpop.eup %424 }
 0x14b   :  { %v185_v45 = vmul.f32 %v425_v44, %v180_v42 }
 0x14d   :  { %v190_v47 = vrot.slane %v185_v45, %v189_v43 }
 0x14f   :  { %v191_v49 = vmul.f32 %v190_v47, %v186_v46 }
 0x151   :  { %v196_v50 = vadd.f32 %v332_v48, %v191_v49 }
 0x153   :  { %v197_v51 = vmax.f32 %v196_v50, 0.0 }
 0x155   :  { %v198_v52 = vpack.c.bf16 %v197_v51, %v197_v51 }
 0x157   :  { %397 = vmatmul.mubr.bf16.vlgmr.msra.gmra.mrb[0].mxu1 %v198_v52 }
 0x22a   :  { %v301_v54 = vpop.f32.mrb[0].mxu1 }
 0x22b   :  { %v302_v55 = vadd.f32 %v333_v53, %v301_v54  ;;  %v398_v56 = vpop.f32.mrb[1].mxu1 }
 0x22c   :  { %v304_v57 = vpop.f32.mrb[2].mxu1 }
 0x22d   :  { %307 = vst [vmem:[#allocation8] sm:$0xff] %v302_v55  ;;  %v399_v58 = vpop.f32.mrb[3].mxu1 }
 0x22e   :  { %503 = shalt.err (!%p500_p0)
}
 0x22f   :  { %s504_s3 = scalar_lea.hbm %s620_s4, 128 }
 0x230   :  { %p505_p1 = scmp.ne.s32.totalorder %s620_s4, %s504_s3  ;;  %p508_p2 = scmp.lt.u32.totalorder %s504_s3, %s620_s4 }
 0x232   :  { %p510_p3 = pnand %p508_p2, %p505_p1 }
 0x234   :  { %513 = shalt.err (!%p510_p3)
}
 0x235   :  { %317 = dma.vmem_to_hbm [thread:$0]  %s315_s5, 128, %s620_s4, [#allocation4]  }
 0x236   :  { %518 = dma.done.wait [#allocation4], 128  }
 0x237   :  { %519 = vsyncadd [#allocation4], 4294967168 }
 0x238   :  { %321 = vsyncpa [#allocation3], 1 }
 0x239   :  { %322 = vsyncpa [#allocation6], 1 }
 0x23a   :  { %323 = vsyncpa [#allocation4], 1 }

</bundles_post_ra>
